<compile_context>
chip_gen: v6e
topology: v6e:2x2x1
jax: 0.10.0
libtpu: 0.0.40
codegen_flags: <defaults>
</compile_context>

<pallas_src>
import functools

import jax
import jax.numpy as jnp
from jax.experimental import pallas as pl
from jax.experimental.pallas import tpu as pltpu


def _round_up(x, m):
    return ((x + m - 1) // m) * m


def _tpu_generation():
    try:
        kind = jax.devices()[0].device_kind.lower()
    except Exception:
        return "unknown"
    if "v5 lite" in kind or "v5lite" in kind or "v5e" in kind:
        return "v5e"
    if "v6" in kind or "trillium" in kind:
        return "v6e"
    if "v7" in kind:
        return "v7x"
    return "unknown"


def _pick_tn(dp, target=512):
    """Largest multiple of 128 <= target that divides dp (dp is a multiple of 128)."""
    cand = (min(dp, target) // 128) * 128
    while cand > 128 and dp % cand:
        cand -= 128
    return max(cand, 128)


def _vmem_estimate(tm, tn, dp, n_j, dtype):
    isz = jnp.dtype(dtype).itemsize
    if n_j == 1:                              # resident-weight path
        return (dp * dp * 2                   # bf16 weight, single-buffered
                + 2 * tm * dp * isz           # x tiles (double-buffered)
                + 2 * tm * dp * isz           # out tiles (double-buffered)
                + 6 * dp * 4                  # bias / scale / shift
                + 4 * tm * dp * 4)            # f32 temporaries / spill headroom
    return (2 * dp * tn * 2                   # weight column tiles (double-buffered)
            + 2 * tm * dp * isz               # x full-row tile
            + 2 * tm * tn * isz               # residual tiles
            + 2 * tm * tn * isz               # out tiles
            + tm * dp * 2                     # LN scratch (bf16)
            + 4 * dp * 4 + 4 * tn * 4         # params
            + 3 * tm * dp * 4)                # f32 temporaries during LN


def _layernorm_rows(x, a, b, *, eps, d_real):
    """LayerNorm over the last axis with fused statistics.  x: (tm, Dp) f32.

    Zero-padded feature lanes (beyond d_real) contribute 0 to both sums and, with
    a/b padded with zeros, produce 0 in the output, so they are harmless.
    """
    sum_x = jnp.sum(x, axis=-1, keepdims=True)
    sum_x2 = jnp.sum(x * x, axis=-1, keepdims=True)
    mean = sum_x * (1.0 / d_real)
    var = (sum_x2 - d_real * mean * mean) * (1.0 / max(d_real - 1, 1))  # unbiased
    t = jnp.sqrt(jnp.maximum(var, 0.0)) + eps
    inv = pl.reciprocal(t, approx=True)          # EUP slot
    inv = inv * (2.0 - t * inv)                  # one Newton step -> ~f32 accuracy
    return a * ((x - mean) * inv) + b


def _sublayer_resident_kernel(x_ref, w_ref, bw_ref, a_ref, b_ref, o_ref, *, eps, d_real):
    x = x_ref[...].astype(jnp.float32)
    y = _layernorm_rows(x, a_ref[...].astype(jnp.float32),
                        b_ref[...].astype(jnp.float32),
                        eps=eps, d_real=d_real).astype(jnp.bfloat16)
    z = jnp.dot(y, w_ref[...], preferred_element_type=jnp.float32)
    z = z + bw_ref[...].astype(jnp.float32)
    # Residual re-read from the ref: the f32 `x` need not stay live across the MXU.
    o_ref[...] = (x_ref[...].astype(jnp.float32) + z).astype(o_ref.dtype)


def _sublayer_tiled_kernel(x_ref, xres_ref, w_ref, bw_ref, a_ref, b_ref,
                           o_ref, y_ref, *, eps, d_real):
    # LayerNorm once per row tile; reused for every output-feature tile j.
    @pl.when(pl.program_id(1) == 0)
    def _():
        x = x_ref[...].astype(jnp.float32)
        y = _layernorm_rows(x, a_ref[...].astype(jnp.float32),
                            b_ref[...].astype(jnp.float32),
                            eps=eps, d_real=d_real)
        y_ref[...] = y.astype(jnp.bfloat16)

    z = jnp.dot(y_ref[...], w_ref[...], preferred_element_type=jnp.float32)
    z = z + bw_ref[...].astype(jnp.float32)
    o_ref[...] = (xres_ref[...].astype(jnp.float32) + z).astype(o_ref.dtype)


def sublayer_connection(x, w, bw, a2, b2, *, eps=1e-6, tm=None, tn=None):
    """x: (B, S, D); w: (D, D); bw / a2 / b2: (D,). Returns (B, S, D)."""
    B, S, D = x.shape
    M = B * S
    gen = _tpu_generation()

    # --- feature padding: lane-dense (multiple of 128) everywhere ---
    Dp = _round_up(D, 128)

    # --- output-feature tile tn (tn | Dp). n_j == 1 -> resident-weight path ---
    if tn is None:
        resident_limit = 2048 if gen in ("v7x", "unknown") else 4096
        tn = Dp if Dp <= resident_limit else _pick_tn(Dp, 512)
    else:
        tn = max(128, min((_round_up(tn, 128) // 128) * 128, Dp))
        while Dp % tn:
            tn -= 128
    n_j = Dp // tn

    # --- row tile tm (sublane-aligned; bf16 LN scratch wants multiples of 16) ---
    sub = max(16, 32 // jnp.dtype(x.dtype).itemsize)
    if tm is None:
        tm = 512 if (gen in ("v5e", "v6e") and Dp <= 2048) else 256
    tm = max(sub, min(_round_up(tm, sub), _round_up(M, sub)))

    # --- per-generation VMEM budget; shrink tm if the estimate busts the cap ---
    cap = {"v7x": 56, "v6e": 104, "v5e": 100}.get(gen, 56) * 1024 * 1024
    while True:
        est = _vmem_estimate(tm, tn, Dp, n_j, x.dtype)
        if int(est * 1.4) <= cap or tm <= sub:
            break
        tm = max(sub, _round_up(tm // 2, sub))
    vmem_limit = int(min(max(int(est * 1.4), 32 * 1024 * 1024), cap))

    Mp = _round_up(M, tm)
    n_i = Mp // tm

    # --- wrapper-side padding / casting (padded rows & lanes are zeros) ---
    x2 = jnp.pad(x.reshape(M, D), ((0, Mp - M), (0, Dp - D)))
    w_p = jnp.pad(w.astype(jnp.bfloat16), ((0, Dp - D), (0, Dp - D)))
    bw_p = jnp.pad(bw.astype(jnp.float32), (0, Dp - D)).reshape(1, Dp)
    a_p = jnp.pad(a2.astype(jnp.float32), (0, Dp - D)).reshape(1, Dp)
    b_p = jnp.pad(b2.astype(jnp.float32), (0, Dp - D)).reshape(1, Dp)

    isz = jnp.dtype(x.dtype).itemsize
    w_reads = 1 if n_j == 1 else n_i          # weight re-streamed per row tile when N-tiled
    cost = pl.CostEstimate(
        flops=2 * Mp * Dp * Dp + 8 * Mp * Dp,
        transcendentals=2 * Mp,               # sqrt + reciprocal per row
        bytes_accessed=(Mp * Dp * isz * (1 if n_j == 1 else 2)   # x (+ residual re-read)
                        + Dp * Dp * 2 * w_reads                  # bf16 weight
                        + Mp * Dp * isz                          # output
                        + 3 * Dp * 4),
    )

    if n_j == 1:
        # ---------- resident-weight path ----------
        kernel = functools.partial(_sublayer_resident_kernel, eps=eps, d_real=D)
        out = pl.pallas_call(
            kernel,
            out_shape=jax.ShapeDtypeStruct((Mp, Dp), x.dtype),
            grid_spec=pltpu.PrefetchScalarGridSpec(
                num_scalar_prefetch=0,
                grid=(n_i,),
                in_specs=[
                    pl.BlockSpec((tm, Dp), lambda i: (i, 0)),                 # x row tile
                    pl.BlockSpec((Dp, Dp), lambda i: (0, 0),
                                 pipeline_mode=pl.Buffered(1)),               # weight (bf16)
                    pl.BlockSpec((1, Dp), lambda i: (0, 0),
                                 pipeline_mode=pl.Buffered(1)),               # sublayer bias
                    pl.BlockSpec((1, Dp), lambda i: (0, 0),
                                 pipeline_mode=pl.Buffered(1)),               # LN scale a_2
                    pl.BlockSpec((1, Dp), lambda i: (0, 0),
                                 pipeline_mode=pl.Buffered(1)),               # LN shift b_2
                ],
                out_specs=pl.BlockSpec((tm, Dp), lambda i: (i, 0)),
            ),
            compiler_params=pltpu.CompilerParams(
                dimension_semantics=("parallel",),
                vmem_limit_bytes=vmem_limit,
            ),
            cost_estimate=cost,
        )(x2, w_p, bw_p, a_p, b_p)
    else:
        # ---------- N-tiled-weight path ----------
        kernel = functools.partial(_sublayer_tiled_kernel, eps=eps, d_real=D)
        out = pl.pallas_call(
            kernel,
            out_shape=jax.ShapeDtypeStruct((Mp, Dp), x.dtype),
            grid_spec=pltpu.PrefetchScalarGridSpec(
                num_scalar_prefetch=0,
                grid=(n_i, n_j),
                in_specs=[
                    pl.BlockSpec((tm, Dp), lambda i, j: (i, 0)),              # x full row (LN)
                    pl.BlockSpec((tm, tn), lambda i, j: (i, j)),              # x residual tile
                    pl.BlockSpec((Dp, tn), lambda i, j: (0, j)),              # weight column tile
                    pl.BlockSpec((1, tn), lambda i, j: (0, j)),               # bias tile
                    pl.BlockSpec((1, Dp), lambda i, j: (0, 0),
                                 pipeline_mode=pl.Buffered(1)),               # LN scale a_2
                    pl.BlockSpec((1, Dp), lambda i, j: (0, 0),
                                 pipeline_mode=pl.Buffered(1)),               # LN shift b_2
                ],
                out_specs=pl.BlockSpec((tm, tn), lambda i, j: (i, j)),
                scratch_shapes=[pltpu.VMEM((tm, Dp), jnp.bfloat16)],          # LN result reuse
            ),
            compiler_params=pltpu.CompilerParams(
                dimension_semantics=("parallel", "arbitrary"),
                vmem_limit_bytes=vmem_limit,
            ),
            cost_estimate=cost,
        )(x2, x2, w_p, bw_p, a_p, b_p)

    return out[:M, :D].reshape(B, S, D)


def _reference(x, w, bw, a2, b2, eps=1e-6):
    """Pure-JAX reference mirroring the kernel numerics (bf16 matmul, f32 accum)."""
    xf = x.astype(jnp.float32)
    d = xf.shape[-1]
    mean = jnp.mean(xf, axis=-1, keepdims=True)
    diff = xf - mean
    std = jnp.sqrt(jnp.sum(diff * diff, axis=-1, keepdims=True) / max(d - 1, 1))
    y = a2 * diff / (std + eps) + b2
    z = jnp.dot(y.astype(jnp.bfloat16).reshape(-1, d), w.astype(jnp.bfloat16),
                preferred_element_type=jnp.float32).reshape(xf.shape) + bw
    return (xf + z).astype(x.dtype)


if __name__ == "__main__":
    key = jax.random.PRNGKey(0)
    kx, kw, kb, kx2, kw2, kb2 = jax.random.split(key, 6)

    # --- test 1: module-sized shapes (resident-weight path; D=32 exercises the
    #     feature padding to 128 lanes) ---
    B, S, D = 2, 8, 32
    x = jax.random.normal(kx, (B, S, D), dtype=jnp.float32)
    a2 = jnp.ones((D,), dtype=jnp.float32)          # LayerNorm a_2 init
    b2 = jnp.zeros((D,), dtype=jnp.float32)         # LayerNorm b_2 init
    w = jax.random.normal(kw, (D, D), dtype=jnp.float32) * 0.05
    bw = jax.random.normal(kb, (D,), dtype=jnp.float32) * 0.05

    out = jax.block_until_ready(sublayer_connection(x, w, bw, a2, b2))
    ref = _reference(x, w, bw, a2, b2)
    assert jnp.allclose(out, ref, atol=1e-3, rtol=1e-3), "mismatch (resident path)"

    # --- test 2: lane-aligned D with forced N-tiling (tiled path: 2-D grid,
    #     streamed weight column tiles, LN scratch reuse across j) ---
    B2, S2, D2 = 2, 64, 256
    x_t = jax.random.normal(kx2, (B2, S2, D2), dtype=jnp.float32)
    a2_t = 1.0 + 0.1 * jax.random.normal(kb2, (D2,), dtype=jnp.float32)
    b2_t = 0.1 * jax.random.normal(kw2, (D2,), dtype=jnp.float32)
    w_t = jax.random.normal(kw2, (D2, D2), dtype=jnp.float32) * 0.02
    bw_t = jax.random.normal(kb2, (D2,), dtype=jnp.float32) * 0.02

    out_t = jax.block_until_ready(
        sublayer_connection(x_t, w_t, bw_t, a2_t, b2_t, tn=128))
    ref_t = _reference(x_t, w_t, bw_t, a2_t, b2_t)
    assert jnp.allclose(out_t, ref_t, atol=5e-3, rtol=5e-3), "mismatch (tiled path)"

    print("KERNEL_OK")
</pallas_src>

<mosaic_0001>
module attributes {stable_mosaic.version = 11 : i64} {
  func.func @_sublayer_resident_kernel(%arg0: i32, %arg1: memref<16x128xf32, #tpu.memory_space<vmem>>, %arg2: memref<128x128xbf16, #tpu.memory_space<vmem>>, %arg3: memref<1x128xf32, #tpu.memory_space<vmem>>, %arg4: memref<1x128xf32, #tpu.memory_space<vmem>>, %arg5: memref<1x128xf32, #tpu.memory_space<vmem>>, %arg6: memref<16x128xf32, #tpu.memory_space<vmem>>) attributes {dimension_semantics = [#tpu.dimension_semantics<parallel>], iteration_bounds = array<i64: 1>, scalar_prefetch = 0 : i64, scratch_operands = 0 : i64, tpu.core_type = #tpu.core_type<tc>, window_params = [{transform_indices = @transform_0, window_bounds = array<i64: 16, 128>}, {pipeline_mode = #tpu.pipeline_mode<synchronous>, transform_indices = @transform_1, window_bounds = array<i64: 128, 128>}, {pipeline_mode = #tpu.pipeline_mode<synchronous>, transform_indices = @transform_2, window_bounds = array<i64: 1, 128>}, {pipeline_mode = #tpu.pipeline_mode<synchronous>, transform_indices = @transform_3, window_bounds = array<i64: 1, 128>}, {pipeline_mode = #tpu.pipeline_mode<synchronous>, transform_indices = @transform_4, window_bounds = array<i64: 1, 128>}, {transform_indices = @transform_5, window_bounds = array<i64: 16, 128>}]} {
    %c0 = arith.constant 0 : index
    %c0_0 = arith.constant 0 : index
    %0 = vector.load %arg1[%c0, %c0_0] : memref<16x128xf32, #tpu.memory_space<vmem>>, vector<16x128xf32>
    %c0_1 = arith.constant 0 : index
    %c0_2 = arith.constant 0 : index
    %1 = vector.load %arg4[%c0_1, %c0_2] : memref<1x128xf32, #tpu.memory_space<vmem>>, vector<1x128xf32>
    %c0_3 = arith.constant 0 : index
    %c0_4 = arith.constant 0 : index
    %2 = vector.load %arg5[%c0_3, %c0_4] : memref<1x128xf32, #tpu.memory_space<vmem>>, vector<1x128xf32>
    %cst = arith.constant dense<0.000000e+00> : vector<16xf32>
    %3 = vector.multi_reduction <add>, %0, %cst [1] : vector<16x128xf32> to vector<16xf32>
    %4 = vector.shape_cast %3 : vector<16xf32> to vector<16x1xf32>
    %5 = arith.mulf %0, %0 : vector<16x128xf32>
    %cst_5 = arith.constant dense<0.000000e+00> : vector<16xf32>
    %6 = vector.multi_reduction <add>, %5, %cst_5 [1] : vector<16x128xf32> to vector<16xf32>
    %7 = vector.shape_cast %6 : vector<16xf32> to vector<16x1xf32>
    %cst_6 = arith.constant 3.125000e-02 : f32
    %8 = vector.broadcast %cst_6 : f32 to vector<16x1xf32>
    %9 = arith.mulf %4, %8 : vector<16x1xf32>
    %cst_7 = arith.constant 3.200000e+01 : f32
    %10 = vector.broadcast %cst_7 : f32 to vector<16x1xf32>
    %11 = arith.mulf %10, %9 : vector<16x1xf32>
    %12 = arith.mulf %11, %9 : vector<16x1xf32>
    %13 = arith.subf %7, %12 : vector<16x1xf32>
    %cst_8 = arith.constant 0.0322580636 : f32
    %14 = vector.broadcast %cst_8 : f32 to vector<16x1xf32>
    %15 = arith.mulf %13, %14 : vector<16x1xf32>
    %cst_9 = arith.constant 0.000000e+00 : f32
    %16 = vector.broadcast %cst_9 : f32 to vector<16x1xf32>
    %17 = arith.maximumf %15, %16 : vector<16x1xf32>
    %18 = math.sqrt %17 : vector<16x1xf32>
    %cst_10 = arith.constant 9.99999997E-7 : f32
    %19 = vector.broadcast %cst_10 : f32 to vector<16x1xf32>
    %20 = arith.addf %18, %19 : vector<16x1xf32>
    %21 = tpu.reciprocal %20 {approx = true} : vector<16x1xf32> -> vector<16x1xf32>
    %22 = arith.mulf %20, %21 : vector<16x1xf32>
    %cst_11 = arith.constant 2.000000e+00 : f32
    %23 = vector.broadcast %cst_11 : f32 to vector<16x1xf32>
    %24 = arith.subf %23, %22 : vector<16x1xf32>
    %25 = arith.mulf %21, %24 : vector<16x1xf32>
    %26 = vector.broadcast %9 : vector<16x1xf32> to vector<16x128xf32>
    %27 = arith.subf %0, %26 : vector<16x128xf32>
    %28 = vector.broadcast %25 : vector<16x1xf32> to vector<16x128xf32>
    %29 = arith.mulf %27, %28 : vector<16x128xf32>
    %30 = vector.broadcast %1 : vector<1x128xf32> to vector<16x128xf32>
    %31 = arith.mulf %30, %29 : vector<16x128xf32>
    %32 = vector.broadcast %2 : vector<1x128xf32> to vector<16x128xf32>
    %33 = arith.addf %31, %32 : vector<16x128xf32>
    %34 = arith.truncf %33 : vector<16x128xf32> to vector<16x128xbf16>
    %c0_12 = arith.constant 0 : index
    %c0_13 = arith.constant 0 : index
    %35 = vector.load %arg2[%c0_12, %c0_13] : memref<128x128xbf16, #tpu.memory_space<vmem>>, vector<128x128xbf16>
    %cst_14 = arith.constant dense<0.000000e+00> : vector<16x128xf32>
    %36 = tpu.matmul %34, %35, %cst_14 {dimension_numbers = #tpu.dot_dimension_numbers<[1], [0], [0], [1], [0, 0, 1, 1], [], []>} : vector<16x128xbf16>, vector<128x128xbf16>, vector<16x128xf32> -> vector<16x128xf32>
    %c0_15 = arith.constant 0 : index
    %c0_16 = arith.constant 0 : index
    %37 = vector.load %arg3[%c0_15, %c0_16] : memref<1x128xf32, #tpu.memory_space<vmem>>, vector<1x128xf32>
    %38 = vector.broadcast %37 : vector<1x128xf32> to vector<16x128xf32>
    %39 = arith.addf %36, %38 : vector<16x128xf32>
    %c0_17 = arith.constant 0 : index
    %c0_18 = arith.constant 0 : index
    %40 = vector.load %arg1[%c0_17, %c0_18] : memref<16x128xf32, #tpu.memory_space<vmem>>, vector<16x128xf32>
    %41 = arith.addf %40, %39 : vector<16x128xf32>
    %c0_19 = arith.constant 0 : index
    %c0_20 = arith.constant 0 : index
    %42 = vector.load %arg6[%c0_19, %c0_20] : memref<16x128xf32, #tpu.memory_space<vmem>>, vector<16x128xf32>
    tpu.vector_store %arg6[%c0_19, %c0_20], %41 {strides = array<i32>} : memref<16x128xf32, #tpu.memory_space<vmem>>, vector<16x128xf32>,
    return
  }
  func.func @transform_0(%arg0: i32) -> (i32, i32) {
    %c0_i32 = arith.constant 0 : i32
    %c0_i32_0 = arith.constant 0 : i32
    return %arg0, %c0_i32 : i32, i32
  }
  func.func @transform_1(%arg0: i32) -> (i32, i32) {
    %c0_i32 = arith.constant 0 : i32
    %c0_i32_0 = arith.constant 0 : i32
    %c0_i32_1 = arith.constant 0 : i32
    return %c0_i32, %c0_i32_0 : i32, i32
  }
  func.func @transform_2(%arg0: i32) -> (i32, i32) {
    %c0_i32 = arith.constant 0 : i32
    %c0_i32_0 = arith.constant 0 : i32
    %c0_i32_1 = arith.constant 0 : i32
    return %c0_i32, %c0_i32_0 : i32, i32
  }
  func.func @transform_3(%arg0: i32) -> (i32, i32) {
    %c0_i32 = arith.constant 0 : i32
    %c0_i32_0 = arith.constant 0 : i32
    %c0_i32_1 = arith.constant 0 : i32
    return %c0_i32, %c0_i32_0 : i32, i32
  }
  func.func @transform_4(%arg0: i32) -> (i32, i32) {
    %c0_i32 = arith.constant 0 : i32
    %c0_i32_0 = arith.constant 0 : i32
    %c0_i32_1 = arith.constant 0 : i32
    return %c0_i32, %c0_i32_0 : i32, i32
  }
  func.func @transform_5(%arg0: i32) -> (i32, i32) {
    %c0_i32 = arith.constant 0 : i32
    %c0_i32_0 = arith.constant 0 : i32
    return %arg0, %c0_i32 : i32, i32
  }
}

</mosaic_0001>

<bundles_post_ra>
// kernel: tpu_custom_call.1
= control target key start
LH: loop header
LB: loop body
LE: loop exit
PB: predicated region body
PF: predicated region fallthrough
CT: control target
= control target key end

     0   :  { %10 = vsyncpa [#allocation3], 0  ;;  %s463_s0 = inlined_call_operand.hbm [shape: f32[16,128], index: 0, kind: input, shape index: {}]   ;;  %s464_s1 = inlined_call_operand.hbm [shape: bf16[128,128], index: 1, kind: input, shape index: {}]   ;;  %s465_s2 = inlined_call_operand.vmem [shape: f32[1,128], index: 2, kind: input, shape index: {}]   ;;  %s466_s3 = inlined_call_operand.vmem [shape: f32[1,128], index: 3, kind: input, shape index: {}]   ;;  %s467_s4 = inlined_call_operand.vmem [shape: f32[1,128], index: 4, kind: input, shape index: {}]   ;;  %s468_s5 = inlined_call_operand.hbm [shape: f32[16,128], index: 5, kind: output, shape index: {}]  }
   0x1   :  { %11 = vsyncpa [#allocation6], 0 }
   0x2   :  { %12 = vsyncpa [#allocation4], 0  ;;  %s386_s18 = smov [#allocation2]  }
   0x3   :  { %s18_s19 = sshll.u32 %s386_s18, 4  ;;  %s19_s19 = int_to_ptr.vmem [resolvable:$true] %s18_s19 }
   0x4   :  { %s328_s20 = scalar_lea.vmem %s19_s19, 256  ;;  %p333_p1 = scmp.lt.s32.totalorder %s19_s19, %s19_s19 }
   0x5   :  { %p329_p0 = scmp.ne.s32.totalorder %s19_s19, %s328_s20  ;;  %p334_p2 = scmp.lt.s32.totalorder %s328_s20, %s328_s20 }
   0x7   :  { %p335_p3 = por %p334_p2, %p333_p1 }
   0x9   :  { %p336_p4 = pnand %p335_p3, %p329_p0 }
   0xb   :  { %339 = shalt.err (!%p336_p4)
}
   0xc   :  { %s387_s21 = smov 128   ;;  %s388_s22 = smov 8  }
   0xd   :  { %24 = dma.hbm_to_vmem [thread:$0]  %s463_s0, 256, %s19_s19, [#allocation3], %s387_s21, %s387_s21, %s388_s22  }
   0xe   :  { %s389_s25 = smov [#allocation5]  }
   0xf   :  { %s30_s26 = sshll.u32 %s389_s25, 4  ;;  %s31_s26 = int_to_ptr.vmem [resolvable:$true] %s30_s26 }
  0x10   :  { %s348_s27 = scalar_lea.vmem %s31_s26, 1024  ;;  %p353_p6 = scmp.lt.s32.totalorder %s31_s26, %s31_s26 }
  0x11   :  { %p349_p5 = scmp.ne.s32.totalorder %s31_s26, %s348_s27  ;;  %p354_p7 = scmp.lt.s32.totalorder %s348_s27, %s348_s27 }
  0x13   :  { %p355_p8 = por %p354_p7, %p353_p6 }
  0x15   :  { %p356_p9 = pnand %p355_p8, %p349_p5 }
  0x17   :  { %359 = shalt.err (!%p356_p9)
}
  0x18   :  { %s390_s28 = smov 64   ;;  %s391_s29 = smov 4  }
  0x19   :  { %36 = dma.hbm_to_vmem [thread:$0]  %s464_s1, 1024, %s31_s26, [#allocation6], %s390_s28, %s390_s28, %s391_s29  }
  0x1a   :  { %380 = dma.done.wait [#allocation3], 256  }
  0x1b   :  { %381 = vsyncadd [#allocation3], 4294967040 }
  0x1c   :  { %382 = dma.done.wait [#allocation6], 1024  }
  0x1d   :  { %383 = vsyncadd [#allocation6], 4294966272  ;;  %v434_v0 = vld [vmem:[#allocation2] sm:$0xff]  ;;  %v436_v1 = vld [vmem:[#allocation2 + $0x8] sm:$0xff]  ;;  %v392_v5 = vmov 0.0   ;;  %vm393_vm0 = vmmov 0  }
  0x1e   :  { %54 = vadd.xlane.f32.xlu0 %v434_v0  ;;  %v58_v2 = vmul.f32 %v434_v0, %v434_v0  ;;  %v59_v3 = vmul.f32 %v436_v1, %v436_v1  ;;  %v304_v4 = vld [vmem:[#allocation5 + $0x38] sm:$0xff]   ;;  %275 = vmatprep.subr.bf16.mxu0 %v392_v5  ;;  %v305_v6 = vld [vmem:[#allocation5 + $0x30] sm:$0xff]   ;;  %v306_v7 = vld [vmem:[#allocation5 + $0x28] sm:$0xff]  }
  0x1f   :  { %291 = vmatprep.mubr.msk.bf16.mxu0 %vm393_vm0, %v392_v5  ;;  %276 = vmatpush3.bf16.msra.mxu0 %v304_v4  ;;  %v307_v8 = vld [vmem:[#allocation5 + $0x20] sm:$0xff]   ;;  %v308_v9 = vld [vmem:[#allocation5 + $0x18] sm:$0xff]   ;;  %v309_v10 = vld [vmem:[#allocation5 + $0x10] sm:$0xff]  }
  0x20   :  { %60 = vadd.xlane.f32.xlu1 %v58_v2  ;;  %277 = vmatprep.subr.bf16.mxu0 %v392_v5  ;;  %v310_v11 = vld [vmem:[#allocation5 + $0x8] sm:$0xff]   ;;  %v311_v12 = vld [vmem:[#allocation5] sm:$0xff]   ;;  %v255_v50 = vld [vmem:[%s466_s3] ss:$0 sm:$0xff]  ;;  %s394_s3 = smov [#allocation7]  }
  0x21   :  { %v256_v55 = vld [vmem:[%s467_s4] ss:$0 sm:$0xff]  ;;  %s242_s11 = sshll.u32 %s394_s3, 4  ;;  %s243_s11 = int_to_ptr.vmem [resolvable:$true] %s242_s11 }
  0x22   :  { %56 = vadd.xlane.f32.xlu0 %v436_v1  ;;  %v257_v60 = vld [vmem:[%s465_s2] ss:$0 sm:$0xff]  ;;  %s360_s4 = scalar_lea.vmem %s243_s11, 256  ;;  %p365_p11 = scmp.lt.s32.totalorder %s243_s11, %s243_s11 }
  0x23   :  { %278 = vmatpush3.bf16.msra.mxu0 %v305_v6  ;;  %p361_p10 = scmp.ne.s32.totalorder %s243_s11, %s360_s4  ;;  %p366_p12 = scmp.lt.s32.totalorder %s360_s4, %s360_s4 }
  0x24   :  { %62 = vadd.xlane.f32.xlu1 %v59_v3  ;;  %279 = vmatprep.subr.bf16.mxu0 %v392_v5 }
  0x25   :  { %p367_p13 = por %p366_p12, %p365_p11 }
  0x27   :  { %280 = vmatpush3.bf16.msra.mxu0 %v306_v7  ;;  %p368_p0 = pnand %p367_p13, %p361_p10 }
  0x28   :  { %281 = vmatprep.subr.bf16.mxu0 %v392_v5 }
  0x2b   :  { %282 = vmatpush3.bf16.msra.mxu0 %v307_v8 }
  0x2c   :  { %283 = vmatprep.subr.bf16.mxu0 %v392_v5 }
  0x2f   :  { %284 = vmatpush3.bf16.msra.mxu0 %v308_v9 }
  0x30   :  { %285 = vmatprep.subr.bf16.mxu0 %v392_v5 }
  0x33   :  { %286 = vmatpush3.bf16.msra.mxu0 %v309_v10 }
  0x34   :  { %287 = vmatprep.subr.bf16.mxu0 %v392_v5 }
  0x37   :  { %288 = vmatpush3.bf16.msra.mxu0 %v310_v11 }
  0x38   :  { %289 = vmatprep.subr.bf16.mxu0 %v392_v5 }
  0x3b   :  { %290 = vmatpush3.bf16.msra.mxu0 %v311_v12 }
  0xa7   :  { %v55_v13 = vpop.xlane.xlu0 %54 }
  0xa8   :  { %v64_v14 = vmul.f32 0.03125, %v55_v13 }
  0xa9   :  { %v61_v15 = vpop.xlane.xlu1 %60 }
  0xaa   :  { %v66_v16 = vmul.f32 32.0, %v64_v14  ;;  %v100_v45 = vsub.f32 %v434_v0, %v64_v14 }
  0xab   :  { %v57_v17 = vpop.xlane.xlu0 %56 }
  0xac   :  { %v65_v18 = vmul.f32 0.03125, %v57_v17  ;;  %v68_v19 = vmul.f32 %v66_v16, %v64_v14 }
  0xad   :  { %v63_v22 = vpop.xlane.xlu1 %62 }
  0xae   :  { %v67_v20 = vmul.f32 32.0, %v65_v18  ;;  %v70_v21 = vsub.f32 %v61_v15, %v68_v19  ;;  %v101_v51 = vsub.f32 %v436_v1, %v65_v18 }
  0xb0   :  { %v72_v23 = vmul.f32 0.032258064, %v70_v21  ;;  %v69_v24 = vmul.f32 %v67_v20, %v65_v18 }
  0xb2   :  { %v74_v25 = vmax.f32 %v72_v23, 0.0  ;;  %v71_v26 = vsub.f32 %v63_v22, %v69_v24 }
  0xb4   :  { %312 = vrsqrt.f32 %v74_v25  ;;  %v73_v27 = vmul.f32 0.032258064, %v71_v26  ;;  %vm78_vm1 = vcmp.eq.f32.partialorder %v74_v25, inf  ;;  %v81_v31 = vand.u32 2147483648, %v74_v25 }
  0xb5   :  { %vm80_vm2 = vcmp.eq.f32.partialorder %v74_v25, 0.0 }
  0xb6   :  { %v75_v28 = vmax.f32 %v73_v27, 0.0 }
  0xb8   :  { %314 = vrsqrt.f32 %v75_v28  ;;  %vm85_vm3 = vcmp.eq.f32.partialorder %v75_v28, inf  ;;  %v88_v37 = vand.u32 2147483648, %v75_v28  ;;  %vm87_vm4 = vcmp.eq.f32.partialorder %v75_v28, 0.0 }
  0xc1   :  { %v313_v29 = vpop.eup %312 }
  0xc2   :  { %v77_v30 = vmul.f32 %v313_v29, %v74_v25 }
  0xc4   :  { %v79_v32 = vsel %vm78_vm1, %v74_v25, %v77_v30 }
  0xc5   :  { %v315_v33 = vpop.eup %314  ;;  %v82_v34 = vsel %vm80_vm2, %v81_v31, %v79_v32 }
  0xc6   :  { %v84_v35 = vmul.f32 %v315_v33, %v75_v28  ;;  %v90_v36 = vadd.f32 1e-06, %v82_v34 }
  0xc8   :  { %v86_v38 = vsel %vm85_vm3, %v75_v28, %v84_v35  ;;  %316 = vrcp.f32 %v90_v36 }
  0xc9   :  { %v89_v39 = vsel %vm87_vm4, %v88_v37, %v86_v38 }
  0xca   :  { %v91_v40 = vadd.f32 1e-06, %v89_v39 }
  0xcc   :  { %318 = vrcp.f32 %v91_v40 }
  0xd5   :  { %v317_v41 = vpop.eup %316 }
  0xd6   :  { %v94_v42 = vmul.f32 %v317_v41, %v90_v36 }
  0xd8   :  { %v96_v43 = vsub.f32 2.0, %v94_v42 }
  0xd9   :  { %v319_v44 = vpop.eup %318 }
  0xda   :  { %v95_v46 = vmul.f32 %v319_v44, %v91_v40  ;;  %v98_v47 = vmul.f32 %v317_v41, %v96_v43 }
  0xdc   :  { %v97_v48 = vsub.f32 2.0, %v95_v46  ;;  %v102_v49 = vmul.f32 %v100_v45, %v98_v47 }
  0xde   :  { %v99_v52 = vmul.f32 %v319_v44, %v97_v48  ;;  %v110_v54 = vmul.f32 %v255_v50, %v102_v49 }
  0xe0   :  { %v103_v53 = vmul.f32 %v101_v51, %v99_v52  ;;  %v118_v57 = vadd.f32 %v256_v55, %v110_v54 }
  0xe2   :  { %v111_v56 = vmul.f32 %v255_v50, %v103_v53 }
  0xe4   :  { %v119_v58 = vadd.f32 %v256_v55, %v111_v56 }
  0xe6   :  { %v120_v59 = vpack.c.bf16 %v119_v58, %v118_v57 }
  0xe8   :  { %292 = vmatmul.mubr.bf16.vlgmr.msra.gmra.mxu0 %v120_v59 }
 0x1a8   :  { %v226_v61 = vpop.f32.mrf.mxu0 }
 0x1a9   :  { %v227_v62 = vadd.f32 %v257_v60, %v226_v61 }
 0x1aa   :  { %v293_v63 = vpop.f32.mrf.mxu0 }
 0x1ab   :  { %v233_v2 = vadd.f32 %v227_v62, %v434_v0 }
 0x1ac   :  { %v229_v3 = vpop.f32.mrf.mxu0 }
 0x1ad   :  { %235 = vst [vmem:[#allocation7] sm:$0xff] %v233_v2  ;;  %v230_v4 = vadd.f32 %v257_v60, %v229_v3 }
 0x1ae   :  { %v294_v5 = vpop.f32.mrf.mxu0 }
 0x1af   :  { %v234_v6 = vadd.f32 %v230_v4, %v436_v1 }
 0x1b1   :  { %236 = vst [vmem:[#allocation7 + $0x8] sm:$0xff] %v234_v6 }
 0x1b2   :  { %371 = shalt.err (!%p368_p0)
}
 0x1b3   :  { %248 = dma.vmem_to_hbm [thread:$0]  %s243_s11, 256, %s468_s5, [#allocation4], %s387_s21, %s387_s21, %s388_s22  }
 0x1b4   :  { %384 = dma.done.wait [#allocation4], 256  }
 0x1b5   :  { %385 = vsyncadd [#allocation4], 4294967040 }
 0x1b6   :  { %252 = vsyncpa [#allocation3], 1 }
 0x1b7   :  { %253 = vsyncpa [#allocation6], 1 }
 0x1b8   :  { %254 = vsyncpa [#allocation4], 1 }

</bundles_post_ra>
